<compile_context>
chip_gen: v6e
topology: v6e:2x2x1
jax: 0.10.0
libtpu: 0.0.40
codegen_flags: <defaults>
</compile_context>

<pallas_src>
import jax
import jax.numpy as jnp
from jax.experimental import pallas as pl
from jax.experimental.pallas import tpu as pltpu


def _add_kernel(a_ref, b_ref, o_ref):
    o_ref[...] = a_ref[...] + b_ref[...]


def pallas_add(a, b):
    assert a.shape == b.shape and a.dtype == b.dtype
    orig_shape = a.shape
    n = a.size
    lane = 128

    if n % lane != 0:
        # Fallback for shapes that aren't lane-divisible (not hit by this module).
        # TODO(synk): add a pad-to-128 path if this is ever exercised.
        return a + b

    rows = n // lane
    a2 = a.reshape(rows, lane)
    b2 = b.reshape(rows, lane)

    itemsize = jnp.dtype(a.dtype).itemsize
    cost = pl.CostEstimate(
        flops=n,
        transcendentals=0,
        bytes_accessed=3 * n * itemsize,
    )

    # Single whole-array block whenever all three operands fit in ~12 MiB of
    # VMEM (leaves headroom under every generation's scoped default).
    single_block_budget_bytes = 12 * 1024 * 1024
    if 3 * rows * lane * itemsize <= single_block_budget_bytes:
        # Small/moderate tensor: one full-array block, no grid, no step overhead.
        # (block_shape == full array dims is exempt from the (8,128) rule.)
        out2 = pl.pallas_call(
            _add_kernel,
            out_shape=jax.ShapeDtypeStruct((rows, lane), a.dtype),
            in_specs=[
                pl.BlockSpec((rows, lane), lambda: (0, 0)),
                pl.BlockSpec((rows, lane), lambda: (0, 0)),
            ],
            out_specs=pl.BlockSpec((rows, lane), lambda: (0, 0)),
            cost_estimate=cost,
        )(a2, b2)
    else:
        # Large-tensor path: 2048-row x 128-lane tiles (1 MiB per f32 block),
        # parallel grid (megacore-shardable on v7x), 3 arrays x 2 buffers x
        # 1 MiB = 6 MiB pipelined VMEM -- safe on v5e/v6e/v7x.
        tile_rows = 2048
        grid = (pl.cdiv(rows, tile_rows),)
        out2 = pl.pallas_call(
            _add_kernel,
            out_shape=jax.ShapeDtypeStruct((rows, lane), a.dtype),
            grid=grid,
            in_specs=[
                pl.BlockSpec((tile_rows, lane), lambda i: (i, 0)),
                pl.BlockSpec((tile_rows, lane), lambda i: (i, 0)),
            ],
            out_specs=pl.BlockSpec((tile_rows, lane), lambda i: (i, 0)),
            cost_estimate=cost,
            compiler_params=pltpu.CompilerParams(
                dimension_semantics=("parallel",)
            ),
        )(a2, b2)

    return out2.reshape(orig_shape)


if __name__ == "__main__":
    key = jax.random.PRNGKey(0)
    k1, k2 = jax.random.split(key)
    # shapes match the module's forward: [1, 384, 7, 7] NCHW
    x846 = jax.random.normal(k1, (1, 384, 7, 7), dtype=jnp.float32)
    x831 = jax.random.normal(k2, (1, 384, 7, 7), dtype=jnp.float32)

    ref = x846 + x831

    out = pallas_add(x846, x831)
    jax.block_until_ready(out)

    assert out.shape == ref.shape
    assert out.dtype == ref.dtype
    assert jnp.allclose(out, ref, atol=1e-6, rtol=1e-6)

    print("KERNEL_OK")
</pallas_src>

<mosaic_0001>
module attributes {stable_mosaic.version = 11 : i64} {
  func.func @_add_kernel(%arg0: memref<147x128xf32, #tpu.memory_space<vmem>>, %arg1: memref<147x128xf32, #tpu.memory_space<vmem>>, %arg2: memref<147x128xf32, #tpu.memory_space<vmem>>) attributes {dimension_semantics = [], scalar_prefetch = 0 : i64, scratch_operands = 0 : i64, tpu.core_type = #tpu.core_type<tc>} {
    %c0 = arith.constant 0 : index
    %c0_0 = arith.constant 0 : index
    %0 = vector.load %arg0[%c0, %c0_0] : memref<147x128xf32, #tpu.memory_space<vmem>>, vector<147x128xf32>
    %c0_1 = arith.constant 0 : index
    %c0_2 = arith.constant 0 : index
    %1 = vector.load %arg1[%c0_1, %c0_2] : memref<147x128xf32, #tpu.memory_space<vmem>>, vector<147x128xf32>
    %2 = arith.addf %0, %1 : vector<147x128xf32>
    %c0_3 = arith.constant 0 : index
    %c0_4 = arith.constant 0 : index
    %3 = vector.load %arg2[%c0_3, %c0_4] : memref<147x128xf32, #tpu.memory_space<vmem>>, vector<147x128xf32>
    tpu.vector_store %arg2[%c0_3, %c0_4], %2 {strides = array<i32>} : memref<147x128xf32, #tpu.memory_space<vmem>>, vector<147x128xf32>,
    return
  }
}

</mosaic_0001>

<bundles_post_ra>
// kernel: tpu_custom_call.1
= control target key start
LH: loop header
LB: loop body
LE: loop exit
PB: predicated region body
PF: predicated region fallthrough
CT: control target
= control target key end

     0   :  { %7 = vsyncpa [#allocation3], 0  ;;  %s243_s0 = inlined_call_operand.hbm [shape: f32[147,128], index: 0, kind: input, shape index: {}]   ;;  %s244_s1 = inlined_call_operand.hbm [shape: f32[147,128], index: 1, kind: input, shape index: {}]   ;;  %s245_s2 = inlined_call_operand.hbm [shape: f32[147,128], index: 2, kind: output, shape index: {}]  }
   0x1   :  { %8 = vsyncpa [#allocation6], 0 }
   0x2   :  { %9 = vsyncpa [#allocation4], 0  ;;  %s205_s9 = smov [#allocation2]  }
   0x3   :  { %s15_s10 = sshll.u32 %s205_s9, 4  ;;  %s16_s10 = int_to_ptr.vmem [resolvable:$true] %s15_s10 }
   0x4   :  { %s147_s11 = scalar_lea.vmem %s16_s10, 2432  ;;  %p152_p1 = scmp.lt.s32.totalorder %s16_s10, %s16_s10 }
   0x5   :  { %p148_p0 = scmp.ne.s32.totalorder %s16_s10, %s147_s11  ;;  %p153_p2 = scmp.lt.s32.totalorder %s147_s11, %s147_s11 }
   0x7   :  { %p154_p3 = por %p153_p2, %p152_p1 }
   0x9   :  { %p155_p4 = pnand %p154_p3, %p148_p0 }
   0xb   :  { %158 = shalt.err (!%p155_p4)
}
   0xc   :  { %s206_s12 = smov 128   ;;  %s207_s13 = smov 8  }
   0xd   :  { %21 = dma.hbm_to_vmem [thread:$0]  %s243_s0, 2432, %s16_s10, [#allocation3], %s206_s12, %s206_s12, %s207_s13  }
   0xe   :  { %s208_s16 = smov [#allocation5]  }
   0xf   :  { %s27_s17 = sshll.u32 %s208_s16, 4  ;;  %s28_s17 = int_to_ptr.vmem [resolvable:$true] %s27_s17 }
  0x10   :  { %s167_s18 = scalar_lea.vmem %s28_s17, 2432  ;;  %p172_p6 = scmp.lt.s32.totalorder %s28_s17, %s28_s17 }
  0x11   :  { %p168_p5 = scmp.ne.s32.totalorder %s28_s17, %s167_s18  ;;  %p173_p7 = scmp.lt.s32.totalorder %s167_s18, %s167_s18 }
  0x13   :  { %p174_p8 = por %p173_p7, %p172_p6 }
  0x15   :  { %p175_p9 = pnand %p174_p8, %p168_p5 }
  0x17   :  { %178 = shalt.err (!%p175_p9)
}
  0x18   :  { %33 = dma.hbm_to_vmem [thread:$0]  %s244_s1, 2432, %s28_s17, [#allocation6], %s206_s12, %s206_s12, %s207_s13  }
  0x19   :  { %199 = dma.done.wait [#allocation3], 2432  }
  0x1a   :  { %200 = vsyncadd [#allocation3], 4294964864 }
  0x1b   :  { %201 = dma.done.wait [#allocation6], 2432  }
  0x1c   :  { %202 = vsyncadd [#allocation6], 4294964864  ;;  %v40_v0 = vld [vmem:[#allocation2] sm:$0xff]  ;;  %v59_v1 = vld [vmem:[#allocation5] sm:$0xff]  ;;  %s209_s0 = smov [#allocation7]  }
  0x1d   :  { %v41_v2 = vld [vmem:[#allocation2 + $0x8] sm:$0xff]  ;;  %v78_v3 = vadd.f32 %v59_v1, %v40_v0  ;;  %v60_v4 = vld [vmem:[#allocation5 + $0x8] sm:$0xff]  ;;  %v42_v5 = vld [vmem:[#allocation2 + $0x10] sm:$0xff]  ;;  %s121_s1 = sshll.u32 %s209_s0, 4  ;;  %s122_s1 = int_to_ptr.vmem [resolvable:$true] %s121_s1 }
  0x1e   :  { %v61_v6 = vld [vmem:[#allocation5 + $0x10] sm:$0xff]  ;;  %v79_v7 = vadd.f32 %v60_v4, %v41_v2  ;;  %v43_v9 = vld [vmem:[#allocation2 + $0x18] sm:$0xff]  ;;  %v62_v10 = vld [vmem:[#allocation5 + $0x18] sm:$0xff]  ;;  %s179_s21 = scalar_lea.vmem %s122_s1, 2432  ;;  %p184_p11 = scmp.lt.s32.totalorder %s122_s1, %s122_s1 }
  0x1f   :  { %v80_v8 = vadd.f32 %v61_v6, %v42_v5  ;;  %v44_v11 = vld [vmem:[#allocation2 + $0x20] sm:$0xff]  ;;  %97 = vst [vmem:[#allocation7] sm:$0xff] %v78_v3  ;;  %v81_v12 = vadd.f32 %v62_v10, %v43_v9  ;;  %v63_v13 = vld [vmem:[#allocation5 + $0x20] sm:$0xff]  ;;  %v45_v14 = vld [vmem:[#allocation2 + $0x28] sm:$0xff]  ;;  %p180_p10 = scmp.ne.s32.totalorder %s122_s1, %s179_s21  ;;  %p185_p12 = scmp.lt.s32.totalorder %s179_s21, %s179_s21 }
  0x20   :  { %v64_v15 = vld [vmem:[#allocation5 + $0x28] sm:$0xff]  ;;  %98 = vst [vmem:[#allocation7 + $0x8] sm:$0xff] %v79_v7  ;;  %v82_v16 = vadd.f32 %v63_v13, %v44_v11  ;;  %v46_v18 = vld [vmem:[#allocation2 + $0x30] sm:$0xff]  ;;  %v65_v19 = vld [vmem:[#allocation5 + $0x30] sm:$0xff] }
  0x21   :  { %99 = vst [vmem:[#allocation7 + $0x10] sm:$0xff] %v80_v8  ;;  %v83_v17 = vadd.f32 %v64_v15, %v45_v14  ;;  %v47_v20 = vld [vmem:[#allocation2 + $0x38] sm:$0xff]  ;;  %100 = vst [vmem:[#allocation7 + $0x18] sm:$0xff] %v81_v12  ;;  %v84_v21 = vadd.f32 %v65_v19, %v46_v18  ;;  %v66_v22 = vld [vmem:[#allocation5 + $0x38] sm:$0xff]  ;;  %p186_p13 = por %p185_p12, %p184_p11 }
  0x22   :  { %v48_v23 = vld [vmem:[#allocation2 + $0x40] sm:$0xff]  ;;  %v67_v24 = vld [vmem:[#allocation5 + $0x40] sm:$0xff]  ;;  %101 = vst [vmem:[#allocation7 + $0x20] sm:$0xff] %v82_v16  ;;  %v85_v25 = vadd.f32 %v66_v22, %v47_v20  ;;  %v49_v27 = vld [vmem:[#allocation2 + $0x48] sm:$0xff] }
  0x23   :  { %102 = vst [vmem:[#allocation7 + $0x28] sm:$0xff] %v83_v17  ;;  %v86_v26 = vadd.f32 %v67_v24, %v48_v23  ;;  %v68_v28 = vld [vmem:[#allocation5 + $0x48] sm:$0xff]  ;;  %v50_v29 = vld [vmem:[#allocation2 + $0x50] sm:$0xff]  ;;  %103 = vst [vmem:[#allocation7 + $0x30] sm:$0xff] %v84_v21  ;;  %p187_p0 = pnand %p186_p13, %p180_p10 }
  0x24   :  { %v87_v30 = vadd.f32 %v68_v28, %v49_v27  ;;  %v69_v31 = vld [vmem:[#allocation5 + $0x50] sm:$0xff]  ;;  %v51_v32 = vld [vmem:[#allocation2 + $0x58] sm:$0xff]  ;;  %v70_v33 = vld [vmem:[#allocation5 + $0x58] sm:$0xff]  ;;  %104 = vst [vmem:[#allocation7 + $0x38] sm:$0xff] %v85_v25 }
  0x25   :  { %105 = vst [vmem:[#allocation7 + $0x40] sm:$0xff] %v86_v26  ;;  %v88_v34 = vadd.f32 %v69_v31, %v50_v29  ;;  %v89_v35 = vadd.f32 %v70_v33, %v51_v32  ;;  %v52_v36 = vld [vmem:[#allocation2 + $0x60] sm:$0xff]  ;;  %v71_v37 = vld [vmem:[#allocation5 + $0x60] sm:$0xff]  ;;  %v53_v38 = vld [vmem:[#allocation2 + $0x68] sm:$0xff] }
  0x26   :  { %106 = vst [vmem:[#allocation7 + $0x48] sm:$0xff] %v87_v30  ;;  %v90_v39 = vadd.f32 %v71_v37, %v52_v36  ;;  %v72_v40 = vld [vmem:[#allocation5 + $0x68] sm:$0xff]  ;;  %v54_v41 = vld [vmem:[#allocation2 + $0x70] sm:$0xff]  ;;  %v73_v42 = vld [vmem:[#allocation5 + $0x70] sm:$0xff] }
  0x27   :  { %107 = vst [vmem:[#allocation7 + $0x50] sm:$0xff] %v88_v34  ;;  %108 = vst [vmem:[#allocation7 + $0x58] sm:$0xff] %v89_v35  ;;  %v91_v43 = vadd.f32 %v72_v40, %v53_v38  ;;  %v92_v44 = vadd.f32 %v73_v42, %v54_v41  ;;  %v55_v45 = vld [vmem:[#allocation2 + $0x78] sm:$0xff]  ;;  %v74_v46 = vld [vmem:[#allocation5 + $0x78] sm:$0xff] }
  0x28   :  { %v56_v47 = vld [vmem:[#allocation2 + $0x80] sm:$0xff]  ;;  %109 = vst [vmem:[#allocation7 + $0x60] sm:$0xff] %v90_v39  ;;  %v93_v48 = vadd.f32 %v74_v46, %v55_v45  ;;  %v75_v49 = vld [vmem:[#allocation5 + $0x80] sm:$0xff]  ;;  %v57_v50 = vld [vmem:[#allocation2 + $0x88] sm:$0xff] }
  0x29   :  { %v76_v51 = vld [vmem:[#allocation5 + $0x88] sm:$0xff]  ;;  %110 = vst [vmem:[#allocation7 + $0x68] sm:$0xff] %v91_v43  ;;  %111 = vst [vmem:[#allocation7 + $0x70] sm:$0xff] %v92_v44  ;;  %v94_v52 = vadd.f32 %v75_v49, %v56_v47  ;;  %v58_v54 = vld [vmem:[#allocation2 + $0x90] sm:$0x7] }
  0x2a   :  { %v95_v53 = vadd.f32 %v76_v51, %v57_v50  ;;  %v77_v55 = vld [vmem:[#allocation5 + $0x90] sm:$0x7]  ;;  %112 = vst [vmem:[#allocation7 + $0x78] sm:$0xff] %v93_v48 }
  0x2b   :  { %v96_v56 = vadd.f32 %v77_v55, %v58_v54  ;;  %113 = vst [vmem:[#allocation7 + $0x80] sm:$0xff] %v94_v52 }
  0x2c   :  { %114 = vst [vmem:[#allocation7 + $0x88] sm:$0xff] %v95_v53 }
  0x2d   :  { %115 = vst [vmem:[#allocation7 + $0x90] sm:$0x7] %v96_v56 }
  0x2e   :  { %190 = shalt.err (!%p187_p0)
}
  0x2f   :  { %127 = dma.vmem_to_hbm [thread:$0]  %s122_s1, 2432, %s245_s2, [#allocation4], %s206_s12, %s206_s12, %s207_s13  }
  0x30   :  { %203 = dma.done.wait [#allocation4], 2432  }
  0x31   :  { %204 = vsyncadd [#allocation4], 4294964864 }
  0x32   :  { %131 = vsyncpa [#allocation3], 1 }
  0x33   :  { %132 = vsyncpa [#allocation6], 1 }
  0x34   :  { %133 = vsyncpa [#allocation4], 1 }

</bundles_post_ra>
